<compile_context>
chip_gen: v6e
topology: v6e:2x2x1
jax: 0.10.0
libtpu: 0.0.40
codegen_flags: <defaults>
</compile_context>

<pallas_src>
import math

import jax
import jax.numpy as jnp
from jax.experimental import pallas as pl
from jax.experimental.pallas import tpu as pltpu


# --------------------------------------------------------------------------- #
# Small helpers
# --------------------------------------------------------------------------- #
def _cdiv(a, b):
    return -(-a // b)


def _round_up(x, m):
    return ((x + m - 1) // m) * m


def _sublane(itemsize):
    # Native sublane packing: f32 -> 8, bf16/f16 -> 16, int8/fp8 -> 32.
    return {4: 8, 2: 16, 1: 32}.get(itemsize, 8)


def _vmem_budget():
    """(block-selection budget, compiler vmem limit), generation aware."""
    try:
        cap = int(pltpu.get_tpu_info().vmem_capacity_bytes)
    except Exception:
        cap = 64 * 1024 * 1024                       # conservative (v7x per-TC)
    limit = min(int(cap * 0.6), 112 * 1024 * 1024)   # ~38 MiB v7x, ~76 MiB v5e/v6e
    budget = int(limit * 0.75)                       # headroom for compiler scratch
    return budget, limit


def _pick_tb(B, sub, fixed_bytes, row_bytes, budget):
    """Largest batch tile (sublane multiple) whose footprint fits the budget."""
    if fixed_bytes + min(B, sub) * row_bytes > budget:
        return None                                  # weights can't stay resident
    if B <= sub:
        return B                                     # full dim (exempt from 8-rule)
    cap = min(512, (B // sub) * sub)
    if B >= 4 * sub:
        # Leave >=2 grid steps so both v7x TensorCores get work.
        cap = min(cap, _round_up(_cdiv(B, 2), sub))
    tb = cap
    while tb > sub and fixed_bytes + tb * row_bytes > budget:
        tb = max(sub, _round_up(tb // 2, sub))
    if fixed_bytes + tb * row_bytes > budget:
        return None
    return tb


# --------------------------------------------------------------------------- #
# Kernels
# --------------------------------------------------------------------------- #
def _ensemble_kernel_3d(x_ref, w_ref, b_ref, o_ref):
    """Per-member-input path (x was (B, K, I)).

    x_ref: (tb, K*I)   w_ref: (K, I, O)   b_ref: (K, 1, O)   o_ref: (tb, K*O)
    Grid: (cdiv(B, tb),).  K is small and static -> the member loop unrolls.
    """
    K, I, O = w_ref.shape
    for k in range(K):
        xk = x_ref[:, k * I:(k + 1) * I]                       # (tb, I) lane slice
        acc = jnp.dot(xk, w_ref[k], preferred_element_type=jnp.float32)
        acc = acc + b_ref[k].astype(jnp.float32)               # (1, O) broadcast
        o_ref[:, k * O:(k + 1) * O] = acc.astype(o_ref.dtype)  # lane-dense store


def _ensemble_kernel_2d(x_ref, w_ref, b_ref, o_ref):
    """Shared-input path (x was (B, I)).

    x_ref: (tb, I)   w_ref: (K, I, O)   b_ref: (K, 1, O)   o_ref: (tb, K*O)
    """
    K, _, O = w_ref.shape
    xv = x_ref[...]
    for k in range(K):
        acc = jnp.dot(xv, w_ref[k], preferred_element_type=jnp.float32)
        acc = acc + b_ref[k].astype(jnp.float32)
        o_ref[:, k * O:(k + 1) * O] = acc.astype(o_ref.dtype)


# --------------------------------------------------------------------------- #
# Wrapper
# --------------------------------------------------------------------------- #
def ensemble_linear(x, weight, bias, *, block_b=None, use_pallas=None):
    """Pallas implementation of EnsembleLinear.forward.

    x: (B, K, I) or (B, I);  weight: (K, I, O);  bias: (K, O)  ->  (B, K, O)
    block_b   : optional batch tile size (auto if None).
    use_pallas: force/forbid the Pallas path; by default small problems (or
                ensembles whose weights cannot be VMEM-resident) use XLA einsum.
    """
    K, I, O = weight.shape
    if x.ndim == 3:
        B = x.shape[0]
        assert x.shape == (B, K, I), f"expected (B,{K},{I}), got {x.shape}"
        shared = False
    else:
        assert x.ndim == 2 and x.shape[1] == I, f"expected (B,{I}), got {x.shape}"
        B = x.shape[0]
        shared = True

    out_dtype = jnp.result_type(x.dtype, weight.dtype)
    flops = 2 * B * K * I * O

    itx = jnp.dtype(x.dtype).itemsize
    itw = jnp.dtype(weight.dtype).itemsize
    itb = jnp.dtype(bias.dtype).itemsize
    ito = jnp.dtype(out_dtype).itemsize
    sub = _sublane(itx)

    budget, limit = _vmem_budget()
    # Weight + bias stay resident (double-buffered allocation); x/out rows stream.
    fixed_bytes = 2 * (K * I * O * itw + K * O * itb)
    row_bytes = 2 * ((I if shared else K * I) * itx + K * O * ito)

    if block_b is None:
        tb = _pick_tb(B, sub, fixed_bytes, row_bytes, budget)
    else:
        tb = B if B <= sub else min(_round_up(int(block_b), sub), (B // sub) * sub)
        if fixed_bytes + tb * row_bytes > budget:
            tb = None

    if use_pallas is None:
        use_pallas = flops >= (1 << 22)
    if (not use_pallas) or tb is None or B == 0:
        # Graceful fallback: tiny problems or weights too large to stay in VMEM.
        eq = "bi,kio->bko" if shared else "bki,kio->bko"
        return (jnp.einsum(eq, x, weight) + bias[None, :, :]).astype(out_dtype)

    x_mat = x if shared else x.reshape(B, K * I)     # free trailing-dim collapse
    x_cols = I if shared else K * I
    bias3 = bias.reshape(K, 1, O)
    kernel = _ensemble_kernel_2d if shared else _ensemble_kernel_3d

    bytes_accessed = (x.size * itx + weight.size * itw + bias.size * itb
                      + B * K * O * ito)

    out_flat = pl.pallas_call(
        kernel,
        out_shape=jax.ShapeDtypeStruct((B, K * O), out_dtype),
        grid_spec=pltpu.PrefetchScalarGridSpec(
            num_scalar_prefetch=0,
            grid=(_cdiv(B, tb),),                     # batch-only grid
            in_specs=[
                pl.BlockSpec((tb, x_cols), lambda b: (b, 0)),     # streams once
                pl.BlockSpec((K, I, O), lambda b: (0, 0, 0)),     # resident weight
                pl.BlockSpec((K, 1, O), lambda b: (0, 0, 0)),     # resident bias
            ],
            out_specs=pl.BlockSpec((tb, K * O), lambda b: (b, 0)),
        ),
        compiler_params=pltpu.CompilerParams(
            dimension_semantics=("parallel",),
            vmem_limit_bytes=limit),
        cost_estimate=pl.CostEstimate(flops=flops, transcendentals=0,
                                      bytes_accessed=bytes_accessed),
    )(x_mat, weight, bias3)

    return out_flat.reshape(B, K, O)                  # free trailing-dim split


# --------------------------------------------------------------------------- #
# Init (mirrors the PyTorch module's bounds)
# --------------------------------------------------------------------------- #
def init_params(key, ensemble_size, input_size, output_size, dtype=jnp.float32):
    """kaiming_uniform_(a=sqrt(5)) on an (I, O) tensor uses fan_in = O, giving
    bound = 1/sqrt(O); the bias uses the same fan_in -> bound = 1/sqrt(O)."""
    kw, kb = jax.random.split(key)
    bound = 1.0 / math.sqrt(output_size)
    weight = jax.random.uniform(
        kw, (ensemble_size, input_size, output_size), dtype,
        minval=-bound, maxval=bound)
    bias = jax.random.uniform(
        kb, (ensemble_size, output_size), dtype,
        minval=-bound, maxval=bound)
    return weight, bias


# --------------------------------------------------------------------------- #
# Demo / self-check
# --------------------------------------------------------------------------- #
if __name__ == "__main__":
    B, K, I, O = 32, 4, 256, 128

    key = jax.random.PRNGKey(0)
    k_param, k_x3, k_x2 = jax.random.split(key, 3)
    weight, bias = init_params(k_param, K, I, O)

    # 3-D input (per-member x)
    x3 = jax.random.normal(k_x3, (B, K, I), jnp.float32)
    out3 = jax.block_until_ready(ensemble_linear(x3, weight, bias, use_pallas=True))
    ref3 = jnp.einsum("bki,kio->bko", x3, weight) + bias[None, :, :]
    assert out3.shape == (B, K, O)
    assert jnp.allclose(out3, ref3, atol=5e-4, rtol=5e-4), \
        float(jnp.max(jnp.abs(out3 - ref3)))

    # 2-D input (shared x)
    x2 = jax.random.normal(k_x2, (B, I), jnp.float32)
    out2 = jax.block_until_ready(ensemble_linear(x2, weight, bias, use_pallas=True))
    ref2 = jnp.einsum("bi,kio->bko", x2, weight) + bias[None, :, :]
    assert out2.shape == (B, K, O)
    assert jnp.allclose(out2, ref2, atol=5e-4, rtol=5e-4), \
        float(jnp.max(jnp.abs(out2 - ref2)))

    # Auto tiling + auto dispatch
    out_auto = jax.block_until_ready(ensemble_linear(x3, weight, bias))
    assert jnp.allclose(out_auto, ref3, atol=5e-4, rtol=5e-4)

    print("KERNEL_OK")
</pallas_src>

<mosaic_0001>
module attributes {stable_mosaic.version = 11 : i64} {
  func.func @_ensemble_kernel_3d(%arg0: i32, %arg1: memref<16x1024xf32, #tpu.memory_space<vmem>>, %arg2: memref<4x256x128xf32, #tpu.memory_space<vmem>>, %arg3: memref<4x1x128xf32, #tpu.memory_space<vmem>>, %arg4: memref<16x512xf32, #tpu.memory_space<vmem>>) attributes {dimension_semantics = [#tpu.dimension_semantics<parallel>], iteration_bounds = array<i64: 2>, scalar_prefetch = 0 : i64, scratch_operands = 0 : i64, tpu.core_type = #tpu.core_type<tc>, window_params = [{transform_indices = @transform_0, window_bounds = array<i64: 16, 1024>}, {pipeline_mode = #tpu.pipeline_mode<synchronous>, transform_indices = @transform_1, window_bounds = array<i64: 4, 256, 128>}, {pipeline_mode = #tpu.pipeline_mode<synchronous>, transform_indices = @transform_2, window_bounds = array<i64: 4, 1, 128>}, {transform_indices = @transform_3, window_bounds = array<i64: 16, 512>}]} {
    %c0 = arith.constant 0 : index
    %c0_0 = arith.constant 0 : index
    %0 = vector.load %arg1[%c0, %c0_0] : memref<16x1024xf32, #tpu.memory_space<vmem>>, vector<16x256xf32>
    %c0_1 = arith.constant 0 : index
    %c0_2 = arith.constant 0 : index
    %c0_3 = arith.constant 0 : index
    %1 = vector.load %arg2[%c0_1, %c0_2, %c0_3] : memref<4x256x128xf32, #tpu.memory_space<vmem>>, vector<1x256x128xf32>
    %2 = vector.shape_cast %1 : vector<1x256x128xf32> to vector<256x128xf32>
    %cst = arith.constant dense<0.000000e+00> : vector<16x128xf32>
    %3 = tpu.matmul %0, %2, %cst {dimension_numbers = #tpu.dot_dimension_numbers<[1], [0], [0], [1], [0, 0, 1, 1], [], []>} : vector<16x256xf32>, vector<256x128xf32>, vector<16x128xf32> -> vector<16x128xf32>
    %c0_4 = arith.constant 0 : index
    %c0_5 = arith.constant 0 : index
    %c0_6 = arith.constant 0 : index
    %4 = vector.load %arg3[%c0_4, %c0_5, %c0_6] : memref<4x1x128xf32, #tpu.memory_space<vmem>>, vector<1x1x128xf32>
    %5 = vector.shape_cast %4 : vector<1x1x128xf32> to vector<1x128xf32>
    %6 = vector.broadcast %5 : vector<1x128xf32> to vector<16x128xf32>
    %7 = arith.addf %3, %6 : vector<16x128xf32>
    %c0_7 = arith.constant 0 : index
    %c0_8 = arith.constant 0 : index
    %8 = vector.load %arg4[%c0_7, %c0_8] : memref<16x512xf32, #tpu.memory_space<vmem>>, vector<16x128xf32>
    tpu.vector_store %arg4[%c0_7, %c0_8], %7 {strides = array<i32>} : memref<16x512xf32, #tpu.memory_space<vmem>>, vector<16x128xf32>,
    %c0_9 = arith.constant 0 : index
    %c256 = arith.constant 256 : index
    %9 = vector.load %arg1[%c0_9, %c256] : memref<16x1024xf32, #tpu.memory_space<vmem>>, vector<16x256xf32>
    %c1 = arith.constant 1 : index
    %c0_10 = arith.constant 0 : index
    %c0_11 = arith.constant 0 : index
    %10 = vector.load %arg2[%c1, %c0_10, %c0_11] : memref<4x256x128xf32, #tpu.memory_space<vmem>>, vector<1x256x128xf32>
    %11 = vector.shape_cast %10 : vector<1x256x128xf32> to vector<256x128xf32>
    %cst_12 = arith.constant dense<0.000000e+00> : vector<16x128xf32>
    %12 = tpu.matmul %9, %11, %cst_12 {dimension_numbers = #tpu.dot_dimension_numbers<[1], [0], [0], [1], [0, 0, 1, 1], [], []>} : vector<16x256xf32>, vector<256x128xf32>, vector<16x128xf32> -> vector<16x128xf32>
    %c1_13 = arith.constant 1 : index
    %c0_14 = arith.constant 0 : index
    %c0_15 = arith.constant 0 : index
    %13 = vector.load %arg3[%c1_13, %c0_14, %c0_15] : memref<4x1x128xf32, #tpu.memory_space<vmem>>, vector<1x1x128xf32>
    %14 = vector.shape_cast %13 : vector<1x1x128xf32> to vector<1x128xf32>
    %15 = vector.broadcast %14 : vector<1x128xf32> to vector<16x128xf32>
    %16 = arith.addf %12, %15 : vector<16x128xf32>
    %c0_16 = arith.constant 0 : index
    %c128 = arith.constant 128 : index
    %17 = vector.load %arg4[%c0_16, %c128] : memref<16x512xf32, #tpu.memory_space<vmem>>, vector<16x128xf32>
    tpu.vector_store %arg4[%c0_16, %c128], %16 {strides = array<i32>} : memref<16x512xf32, #tpu.memory_space<vmem>>, vector<16x128xf32>,
    %c0_17 = arith.constant 0 : index
    %c512 = arith.constant 512 : index
    %18 = vector.load %arg1[%c0_17, %c512] : memref<16x1024xf32, #tpu.memory_space<vmem>>, vector<16x256xf32>
    %c2 = arith.constant 2 : index
    %c0_18 = arith.constant 0 : index
    %c0_19 = arith.constant 0 : index
    %19 = vector.load %arg2[%c2, %c0_18, %c0_19] : memref<4x256x128xf32, #tpu.memory_space<vmem>>, vector<1x256x128xf32>
    %20 = vector.shape_cast %19 : vector<1x256x128xf32> to vector<256x128xf32>
    %cst_20 = arith.constant dense<0.000000e+00> : vector<16x128xf32>
    %21 = tpu.matmul %18, %20, %cst_20 {dimension_numbers = #tpu.dot_dimension_numbers<[1], [0], [0], [1], [0, 0, 1, 1], [], []>} : vector<16x256xf32>, vector<256x128xf32>, vector<16x128xf32> -> vector<16x128xf32>
    %c2_21 = arith.constant 2 : index
    %c0_22 = arith.constant 0 : index
    %c0_23 = arith.constant 0 : index
    %22 = vector.load %arg3[%c2_21, %c0_22, %c0_23] : memref<4x1x128xf32, #tpu.memory_space<vmem>>, vector<1x1x128xf32>
    %23 = vector.shape_cast %22 : vector<1x1x128xf32> to vector<1x128xf32>
    %24 = vector.broadcast %23 : vector<1x128xf32> to vector<16x128xf32>
    %25 = arith.addf %21, %24 : vector<16x128xf32>
    %c0_24 = arith.constant 0 : index
    %c256_25 = arith.constant 256 : index
    %26 = vector.load %arg4[%c0_24, %c256_25] : memref<16x512xf32, #tpu.memory_space<vmem>>, vector<16x128xf32>
    tpu.vector_store %arg4[%c0_24, %c256_25], %25 {strides = array<i32>} : memref<16x512xf32, #tpu.memory_space<vmem>>, vector<16x128xf32>,
    %c0_26 = arith.constant 0 : index
    %c768 = arith.constant 768 : index
    %27 = vector.load %arg1[%c0_26, %c768] : memref<16x1024xf32, #tpu.memory_space<vmem>>, vector<16x256xf32>
    %c3 = arith.constant 3 : index
    %c0_27 = arith.constant 0 : index
    %c0_28 = arith.constant 0 : index
    %28 = vector.load %arg2[%c3, %c0_27, %c0_28] : memref<4x256x128xf32, #tpu.memory_space<vmem>>, vector<1x256x128xf32>
    %29 = vector.shape_cast %28 : vector<1x256x128xf32> to vector<256x128xf32>
    %cst_29 = arith.constant dense<0.000000e+00> : vector<16x128xf32>
    %30 = tpu.matmul %27, %29, %cst_29 {dimension_numbers = #tpu.dot_dimension_numbers<[1], [0], [0], [1], [0, 0, 1, 1], [], []>} : vector<16x256xf32>, vector<256x128xf32>, vector<16x128xf32> -> vector<16x128xf32>
    %c3_30 = arith.constant 3 : index
    %c0_31 = arith.constant 0 : index
    %c0_32 = arith.constant 0 : index
    %31 = vector.load %arg3[%c3_30, %c0_31, %c0_32] : memref<4x1x128xf32, #tpu.memory_space<vmem>>, vector<1x1x128xf32>
    %32 = vector.shape_cast %31 : vector<1x1x128xf32> to vector<1x128xf32>
    %33 = vector.broadcast %32 : vector<1x128xf32> to vector<16x128xf32>
    %34 = arith.addf %30, %33 : vector<16x128xf32>
    %c0_33 = arith.constant 0 : index
    %c384 = arith.constant 384 : index
    %35 = vector.load %arg4[%c0_33, %c384] : memref<16x512xf32, #tpu.memory_space<vmem>>, vector<16x128xf32>
    tpu.vector_store %arg4[%c0_33, %c384], %34 {strides = array<i32>} : memref<16x512xf32, #tpu.memory_space<vmem>>, vector<16x128xf32>,
    return
  }
  func.func @transform_0(%arg0: i32) -> (i32, i32) {
    %c0_i32 = arith.constant 0 : i32
    %c0_i32_0 = arith.constant 0 : i32
    return %arg0, %c0_i32 : i32, i32
  }
  func.func @transform_1(%arg0: i32) -> (i32, i32, i32) {
    %c0_i32 = arith.constant 0 : i32
    %c0_i32_0 = arith.constant 0 : i32
    %c0_i32_1 = arith.constant 0 : i32
    %c0_i32_2 = arith.constant 0 : i32
    return %c0_i32, %c0_i32_0, %c0_i32_1 : i32, i32, i32
  }
  func.func @transform_2(%arg0: i32) -> (i32, i32, i32) {
    %c0_i32 = arith.constant 0 : i32
    %c0_i32_0 = arith.constant 0 : i32
    %c0_i32_1 = arith.constant 0 : i32
    %c0_i32_2 = arith.constant 0 : i32
    return %c0_i32, %c0_i32_0, %c0_i32_1 : i32, i32, i32
  }
  func.func @transform_3(%arg0: i32) -> (i32, i32) {
    %c0_i32 = arith.constant 0 : i32
    %c0_i32_0 = arith.constant 0 : i32
    return %arg0, %c0_i32 : i32, i32
  }
}

</mosaic_0001>

<bundles_post_ra>
// kernel: tpu_custom_call.1
= control target key start
LH: loop header
LB: loop body
LE: loop exit
PB: predicated region body
PF: predicated region fallthrough
CT: control target
= control target key end

     0   :  { %8 = vsyncpa [#allocation3], 0  ;;  %s1469_s0 = inlined_call_operand.hbm [shape: f32[32,1024], index: 0, kind: input, shape index: {}]   ;;  %s1470_s1 = inlined_call_operand.hbm [shape: f32[4,256,128], index: 1, kind: input, shape index: {}]   ;;  %s1471_s2 = inlined_call_operand.hbm [shape: f32[4,1,128], index: 2, kind: input, shape index: {}]   ;;  %s1472_s3 = inlined_call_operand.hbm [shape: f32[32,512], index: 3, kind: output, shape index: {}]  }
   0x1   :  { %10 = vsyncpa [#allocation3 + $0x1], 0 }
   0x2   :  { %11 = vsyncpa [#allocation6], 0 }
   0x3   :  { %12 = vsyncpa [#allocation4], 0 }
   0x4   :  { %14 = vsyncpa [#allocation4 + $0x1], 0  ;;  %s1251_s12 = smov 0   ;;  %s1253_s13 = smov 0  }
   0x5   :  { %s1255_s14 = smov 0   ;;  %s1257_s15 = smov 0  }
   0x6 LB: > { %s1272_s16 = sadd.s32 4294967295, %s1217_s15   ;;  %s814_s17 = sadd.s32 4294967294, %s1217_s15   ;;  %s1217_s15 = sphi %s1257_s15, %s1494_s15   ;;  %s1213_s14 = sphi %s1255_s14, %s1493_s14   ;;  %s1209_s13 = sphi %s1253_s13, %s1492_s13   ;;  %s1205_s12 = sphi %s1251_s12, %s1491_s12  }
   0x7   : > { %p40_p0 = scmp.ne.s32.totalorder %s1209_s13, %s1205_s12  ;;  %p1473_p1 = scmp.eq.s32.totalorder %s1272_s16, 0 }
   0x8   : > { %p112_p3 = scmp.eq.s32.totalorder %s814_s17, 1  ;;  %p815_p5 = scmp.ge.s32.totalorder %s1217_s15, 1 }
   0x9   : > { %p1281_p4 = por %p1473_p1, %p40_p0  ;;  %p119_p7 = scmp.lt.s32.totalorder %s1217_s15, 3 }
   0xa   : > { %p1286_p6 = por %p112_p3, %p40_p0  ;;  %s1219_s21 = smov [#allocation5]  }
   0xb   : > { %s1477_s18 = scalar_select %p1281_p4, 1, 0 }
   0xc   : > { %s1478_s19 = scalar_select %p1286_p6, 1, 0 }
   0xd   : > { %p1291_p8 = pnand %p815_p5, %p119_p7  ;;  %s131_s22 = sshll.u32 %s1219_s21, 4  ;;  %s132_s22 = int_to_ptr.vmem [resolvable:$true] %s131_s22 }
   0xe   : > { %s1220_s24 = smov [#allocation7]   ;;  %s1080_s26 = scalar_lea.vmem %s132_s22, 16384 }
   0xf   : > { %s1479_s20 = scalar_select %p1291_p8, 1, 0 }
  0x10   : > { %p1006_p9 = pneg %p1291_p8  ;;  %s144_s25 = sshll.u32 %s1220_s24, 4  ;;  %s145_s25 = int_to_ptr.vmem [resolvable:$true] %s144_s25 }
  0x11   : > { %p1081_p13 = scmp.ne.s32.totalorder %s132_s22, %s1080_s26  ;;  %p1088_p5 = scmp.lt.s32.totalorder %s132_s22, %s132_s22 }
  0x12   : > { %p1300_p11 = pnand %p1006_p9, %p1473_p1  ;;  %p1089_p7 = scmp.lt.s32.totalorder %s1080_s26, %s1080_s26 }
  0x14   : > { %p1071_p12 = pneg %p1300_p11  ;;  %p1090_p10 = por %p1089_p7, %p1088_p5 }
  0x16   : > { %p1083_p0 = pnand %p1081_p13, %p1071_p12 }
  0x18   : > { %p1084_p3 = pneg %p1083_p0 }
  0x1a   : > { %p1091_p9 = pnand %p1090_p10, %p1084_p3 }
  0x1c   : > { %1094 = shalt.err (!%p1091_p9)
}
  0x1d   : > { %s1221_s27 = smov 128   ;;  %s1222_s28 = smov 8  }
  0x1e   : > { %1009 = dma.hbm_to_vmem [thread:$0]  (!%p1300_p11), %s1470_s1, 16384, %s132_s22, [#allocation6], %s1221_s27, %s1221_s27, %s1222_s28  }
  0x1f   : > { %s1106_s4 = scalar_lea.vmem %s145_s25, 64  ;;  %p1114_p2 = scmp.lt.s32.totalorder %s145_s25, %s145_s25 }
  0x20   : > { %p1107_p1 = scmp.ne.s32.totalorder %s145_s25, %s1106_s4  ;;  %p1115_p6 = scmp.lt.s32.totalorder %s1106_s4, %s1106_s4 }
  0x22   : > { %p1109_p13 = pnand %p1107_p1, %p1071_p12  ;;  %p1116_p5 = por %p1115_p6, %p1114_p2 }
  0x24   : > { %p1110_p0 = pneg %p1109_p13 }
  0x26   : > { %p1117_p10 = pnand %p1116_p5, %p1110_p0 }
  0x28   : > { %1120 = shalt.err (!%p1117_p10)
}
  0x29   : > { %s1223_s5 = smov 16   ;;  %s1224_s6 = smov 1  }
  0x2a   : > { %1012 = dma.hbm_to_vmem [thread:$0]  (!%p1300_p11), %s1471_s2, 64, %s145_s25, [#allocation6], %s1223_s5, %s1223_s5, %s1224_s6  }
  0x2b   : > { %s1323_s9 = sadd.s32 1, %s1217_s15   ;;  %s27_s11 = sadd.s32 1, %s1213_s14 }
  0x2c   : > { %s24_s10 = ssub.s32 %s1217_s15, %s1323_s9  ;;  %p34_p2 = scmp.ne.s32.totalorder %s1213_s14, %s1209_s13 }
  0x2d   : > { %p25_p1 = scmp.eq.s32.totalorder %s24_s10, 0  ;;  %p35_p6 = scmp.eq.s32.totalorder %s1217_s15, 0 }
  0x2e   : > { %p1481_p3 = scmp.eq.s32.totalorder %s1272_s16, 1  ;;  %p1023_p9 = scmp.lt.s32.totalorder %s1217_s15, 2 }
  0x2f   : > { %s1332_s17 = scalar_select %p25_p1, %s1213_s14, %s27_s11  }
  0x30   : > { %p36_p12 = por %p35_p6, %p34_p2  ;;  %p1336_p7 = por %p1481_p3, %p34_p2 }
  0x31   : > { %s158_s22 = sand.u32 1, %s1213_s14   ;;  %s839_s24 = sshll.u32 %s1217_s15, 11 }
  0x32   : > { %s1482_s21 = scalar_select %p1336_p7, 1, 0 }
  0x33   : > { %s819_s23 = sshll.u32 %s158_s22, 7  ;;  %s1346_s27 = scalar_lea.hbm %s1469_s0, %s839_s24 }
  0x34   : > { %s162_s28 = scalar_lea.vmem [#allocation2], %s819_s23  ;;  %p1350_p11 = pnand %p1023_p9, %p36_p12 }
  0x35   : > { %s170_s29 = sshll.u32 %s162_s28, 4  ;;  %s1354_s4 = scalar_lea.sflag [#allocation3], %s158_s22  ;;  %s1348_s29 = int_to_ptr.vmem [resolvable:$true] %s170_s29 }
  0x36   : > { %s1121_s5 = scalar_lea.hbm %s1346_s27, 2048  ;;  %p1123_p0 = pneg %p1350_p11 }
  0x37   : > { %p1122_p13 = scmp.ne.s32.totalorder %s1346_s27, %s1121_s5  ;;  %s1126_s8 = scalar_lea.hbm %s1469_s0, 4096 }
  0x38   : > { %p1127_p1 = scmp.lt.s32.totalorder %s1346_s27, %s1469_s0  ;;  %p1128_p2 = scmp.lt.s32.totalorder %s1126_s8, %s1121_s5 }
  0x39   : > { %p1124_p5 = pnand %p1123_p0, %p1122_p13 }
  0x3a   : > { %p1129_p6 = por %p1128_p2, %p1127_p1 }
  0x3b   : > { %p1125_p10 = pneg %p1124_p5 }
  0x3d   : > { %p1130_p12 = pnand %p1129_p6, %p1125_p10 }
  0x3f   : > { %1133 = shalt.err (!%p1130_p12)
}
  0x40   : > { %s1134_s22 = scalar_lea.vmem %s1348_s29, 2048  ;;  %s1225_s23 = smov [#allocation2]  }
  0x41   : > { %p1135_p3 = scmp.ne.s32.totalorder %s1348_s29, %s1134_s22  ;;  %s1139_s24 = sshll.u32 %s1225_s23, 4  ;;  %s1140_s24 = int_to_ptr.vmem [resolvable:$false] %s1139_s24 }
  0x42   : > { %s1141_s25 = scalar_lea.vmem %s1140_s24, 4096  ;;  %p1142_p5 = scmp.lt.s32.totalorder %s1348_s29, %s1140_s24 }
  0x43   : > { %p1137_p9 = pnand %p1135_p3, %p1123_p0  ;;  %p1143_p7 = scmp.lt.s32.totalorder %s1141_s25, %s1134_s22 }
  0x45   : > { %p1138_p13 = pneg %p1137_p9  ;;  %p1144_p4 = por %p1143_p7, %p1142_p5 }
  0x47   : > { %p1145_p8 = pnand %p1144_p4, %p1138_p13 }
  0x49   : > { %1148 = shalt.err (!%p1145_p8)
}
  0x4a   : > { %s1226_s26 = smov 1024   ;;  %s1227_s28 = smov 64  }
  0x4b   : > { %1016 = dma.hbm_to_vmem [thread:$0]  (!%p1350_p11), %s1346_s27, 2048, %s1348_s29, %s1354_s4, %s1226_s26, %s1226_s26, %s1227_s28  }
  0x4c   : > { %p1484_p0 = scmp.ne.s32.totalorder %s1479_s20, 0 }
  0x4d   : > { %s1378_s5 = sand.u32 (!%p1484_p0), 1, %s1209_s13   ;;  %p1485_p4 = scmp.ne.s32.totalorder (!%p1484_p0), %s1477_s18, 0 }
  0x4e   : > { %182 = sbr.rel (%p1484_p0) target bundleno = 376 (0x178), region = 32  ;;  %s824_s6 = sshll.u32 (!%p1484_p0), %s1378_s5, 7 }
  0x4f   : > { %s185_s7 = scalar_lea.sflag (!%p1484_p0), [#allocation3], %s1378_s5  ;;  %s1382_s8 = scalar_lea.vmem (!%p1484_p0), [#allocation2], %s824_s6 }
  0x53   : > { %1192 = dma.done.wait (%p1485_p4), %s185_s7, 2048  }
  0x54   : > { %1194 = vsyncadd (%p1485_p4), %s185_s7, 4294965248  ;;  %p1486_p8 = scmp.eq.s32.totalorder %s1272_s16, 0 }
  0x56   : > { %1196 = dma.done.wait (%p1486_p8), [#allocation6], 16448   ;;  %p1487_p7 = pmov %p1486_p8 }
  0x57   : > { %v256_v0 = vld [vmem:[#allocation5 + $0xf8] sm:$0xff]  ;;  %v255_v4 = vld [vmem:[#allocation5 + $0xf0] sm:$0xff]  ;;  %v254_v8 = vld [vmem:[#allocation5 + $0xe8] sm:$0xff]  ;;  %s827_s18 = sshll.u32 %s1378_s5, 6  ;;  %s841_s29 = sshll.u32 %s1272_s16, 10 }
  0x58   : > { %1198 = vsyncadd (%p1487_p7), [#allocation6], 4294950848  ;;  %v377_v1 = vld [vmem:[#allocation5 + $0x1f8] sm:$0xff]  ;;  %842 = vmatprep.subr.mxu0 %v256_v0  ;;  %v376_v5 = vld [vmem:[#allocation5 + $0x1f0] sm:$0xff]  ;;  %s1409_s20 = scalar_lea.vmem [#allocation8], %s827_s18  ;;  %s1424_s10 = scalar_lea.hbm %s1472_s3, %s841_s29 }
  0x59   : > { %v240_v2 = vld [vmem:[#allocation5 + $0x78] sm:$0xff]  ;;  %880 = vmatprep.subr.mxu1 %v377_v1  ;;  %v239_v6 = vld [vmem:[#allocation5 + $0x70] sm:$0xff]  ;;  %v375_v9 = vld [vmem:[#allocation5 + $0x1e8] sm:$0xff]  ;;  %s722_s27 = sshll.u32 %s1409_s20, 4  ;;  %s708_s16 = scalar_lea.sflag [#allocation4], %s1378_s5  ;;  %s1417_s27 = int_to_ptr.vmem [resolvable:$true] %s722_s27 }
  0x5a   : > { %v361_v3 = vld [vmem:[#allocation5 + $0x178] sm:$0xff]  ;;  %843 = vmatpush3.msra.mxu0 %v240_v2  ;;  %v360_v7 = vld [vmem:[#allocation5 + $0x170] sm:$0xff]  ;;  %v238_v10 = vld [vmem:[#allocation5 + $0x68] sm:$0xff]  ;;  %s1149_s11 = scalar_lea.vmem %s1417_s27, 1024  ;;  %p1488_p10 = scmp.ne.s32.totalorder %s1482_s21, 0 }
  0x5b   : > { %881 = vmatpush3.msra.mxu1 %v361_v3  ;;  %844 = vmatprep.subr.mxu0 %v255_v4  ;;  %v359_v11 = vld [vmem:[#allocation5 + $0x168] sm:$0xff]  ;;  %v253_v12 = vld [vmem:[#allocation5 + $0xe0] sm:$0xff]  ;;  %v252_v16 = vld [vmem:[#allocation5 + $0xd8] sm:$0xff]  ;;  %p1150_p11 = scmp.ne.s32.totalorder %s1417_s27, %s1149_s11  ;;  %s1228_s22 = smov [#allocation8]  }
  0x5c   : > { %882 = vmatprep.subr.mxu1 %v376_v5  ;;  %845 = vmatpush3.msra.mxu0 %v239_v6  ;;  %v374_v13 = vld [vmem:[#allocation5 + $0x1e0] sm:$0xff]  ;;  %v373_v17 = vld [vmem:[#allocation5 + $0x1d8] sm:$0xff]  ;;  %v251_v20 = vld [vmem:[#allocation5 + $0xd0] sm:$0xff]  ;;  %s1153_s23 = sshll.u32 %s1228_s22, 4  ;;  %s1154_s23 = int_to_ptr.vmem [resolvable:$false] %s1153_s23 }
  0x5d   : > { %883 = vmatpush3.msra.mxu1 %v360_v7  ;;  %846 = vmatprep.subr.mxu0 %v254_v8  ;;  %v237_v14 = vld [vmem:[#allocation5 + $0x60] sm:$0xff]  ;;  %v236_v18 = vld [vmem:[#allocation5 + $0x58] sm:$0xff]  ;;  %v372_v21 = vld [vmem:[#allocation5 + $0x1d0] sm:$0xff]  ;;  %p1151_p1 = pnand %p1150_p11, %p1488_p10  ;;  %s1155_s24 = scalar_lea.vmem %s1154_s23, 2048 }
  0x5e   : > { %884 = vmatprep.subr.mxu1 %v375_v9  ;;  %v358_v15 = vld [vmem:[#allocation5 + $0x160] sm:$0xff]  ;;  %847 = vmatpush3.msra.mxu0 %v238_v10  ;;  %v357_v19 = vld [vmem:[#allocation5 + $0x158] sm:$0xff]  ;;  %v235_v22 = vld [vmem:[#allocation5 + $0x50] sm:$0xff]  ;;  %p1156_p6 = scmp.lt.s32.totalorder %s1417_s27, %s1154_s23  ;;  %p1157_p12 = scmp.lt.s32.totalorder %s1155_s24, %s1149_s11 }
  0x5f   : > { %885 = vmatpush3.msra.mxu1 %v359_v11  ;;  %848 = vmatprep.subr.mxu0 %v253_v12  ;;  %v356_v23 = vld [vmem:[#allocation5 + $0x150] sm:$0xff]  ;;  %v250_v24 = vld [vmem:[#allocation5 + $0xc8] sm:$0xff]  ;;  %v249_v28 = vld [vmem:[#allocation5 + $0xc0] sm:$0xff]  ;;  %p1152_p2 = pneg %p1151_p1 }
  0x60   : > { %886 = vmatprep.subr.mxu1 %v374_v13  ;;  %849 = vmatpush3.msra.mxu0 %v237_v14  ;;  %v371_v25 = vld [vmem:[#allocation5 + $0x1c8] sm:$0xff]  ;;  %v370_v29 = vld [vmem:[#allocation5 + $0x1c0] sm:$0xff]  ;;  %v248_v32 = vld [vmem:[#allocation5 + $0xb8] sm:$0xff]  ;;  %p1158_p3 = por %p1157_p12, %p1156_p6 }
  0x61   : > { %887 = vmatpush3.msra.mxu1 %v358_v15  ;;  %850 = vmatprep.subr.mxu0 %v252_v16  ;;  %v234_v26 = vld [vmem:[#allocation5 + $0x48] sm:$0xff]  ;;  %v233_v30 = vld [vmem:[#allocation5 + $0x40] sm:$0xff]  ;;  %v369_v33 = vld [vmem:[#allocation5 + $0x1b8] sm:$0xff] }
  0x62   : > { %888 = vmatprep.subr.mxu1 %v373_v17  ;;  %851 = vmatpush3.msra.mxu0 %v236_v18  ;;  %v355_v27 = vld [vmem:[#allocation5 + $0x148] sm:$0xff]  ;;  %v354_v31 = vld [vmem:[#allocation5 + $0x140] sm:$0xff]  ;;  %v232_v34 = vld [vmem:[#allocation5 + $0x38] sm:$0xff]  ;;  %p1159_p9 = pnand %p1158_p3, %p1152_p2 }
  0x63   : > { %889 = vmatpush3.msra.mxu1 %v357_v19  ;;  %852 = vmatprep.subr.mxu0 %v251_v20  ;;  %v353_v35 = vld [vmem:[#allocation5 + $0x138] sm:$0xff]  ;;  %v247_v36 = vld [vmem:[#allocation5 + $0xb0] sm:$0xff]  ;;  %v246_v40 = vld [vmem:[#allocation5 + $0xa8] sm:$0xff] }
  0x64   : > { %890 = vmatprep.subr.mxu1 %v372_v21  ;;  %853 = vmatpush3.msra.mxu0 %v235_v22  ;;  %v368_v37 = vld [vmem:[#allocation5 + $0x1b0] sm:$0xff]  ;;  %v367_v41 = vld [vmem:[#allocation5 + $0x1a8] sm:$0xff]  ;;  %v245_v44 = vld [vmem:[#allocation5 + $0xa0] sm:$0xff] }
  0x65   : > { %891 = vmatpush3.msra.mxu1 %v356_v23  ;;  %854 = vmatprep.subr.mxu0 %v250_v24  ;;  %v231_v38 = vld [vmem:[#allocation5 + $0x30] sm:$0xff]  ;;  %v230_v42 = vld [vmem:[#allocation5 + $0x28] sm:$0xff]  ;;  %v366_v45 = vld [vmem:[#allocation5 + $0x1a0] sm:$0xff] }
  0x66   : > { %892 = vmatprep.subr.mxu1 %v371_v25  ;;  %855 = vmatpush3.msra.mxu0 %v234_v26  ;;  %v352_v39 = vld [vmem:[#allocation5 + $0x130] sm:$0xff]  ;;  %v351_v43 = vld [vmem:[#allocation5 + $0x128] sm:$0xff]  ;;  %v229_v46 = vld [vmem:[#allocation5 + $0x20] sm:$0xff] }
  0x67   : > { %893 = vmatpush3.msra.mxu1 %v355_v27  ;;  %856 = vmatprep.subr.mxu0 %v249_v28  ;;  %v350_v47 = vld [vmem:[#allocation5 + $0x120] sm:$0xff]  ;;  %v244_v48 = vld [vmem:[#allocation5 + $0x98] sm:$0xff]  ;;  %v243_v52 = vld [vmem:[#allocation5 + $0x90] sm:$0xff] }
  0x68   : > { %894 = vmatprep.subr.mxu1 %v370_v29  ;;  %857 = vmatpush3.msra.mxu0 %v233_v30  ;;  %v365_v49 = vld [vmem:[#allocation5 + $0x198] sm:$0xff]  ;;  %v364_v53 = vld [vmem:[#allocation5 + $0x190] sm:$0xff]  ;;  %v242_v56 = vld [vmem:[#allocation5 + $0x88] sm:$0xff] }
  0x69   : > { %895 = vmatpush3.msra.mxu1 %v354_v31  ;;  %858 = vmatprep.subr.mxu0 %v248_v32  ;;  %v228_v50 = vld [vmem:[#allocation5 + $0x18] sm:$0xff]  ;;  %v227_v54 = vld [vmem:[#allocation5 + $0x10] sm:$0xff]  ;;  %v363_v57 = vld [vmem:[#allocation5 + $0x188] sm:$0xff] }
  0x6a   : > { %896 = vmatprep.subr.mxu1 %v369_v33  ;;  %859 = vmatpush3.msra.mxu0 %v232_v34  ;;  %v349_v51 = vld [vmem:[#allocation5 + $0x118] sm:$0xff]  ;;  %v348_v55 = vld [vmem:[#allocation5 + $0x110] sm:$0xff]  ;;  %v226_v58 = vld [vmem:[#allocation5 + $0x8] sm:$0xff] }
  0x6b   : > { %897 = vmatpush3.msra.mxu1 %v353_v35  ;;  %860 = vmatprep.subr.mxu0 %v247_v36  ;;  %v347_v59 = vld [vmem:[#allocation5 + $0x108] sm:$0xff]  ;;  %v241_v60 = vld [vmem:[#allocation5 + $0x80] sm:$0xff]  ;;  %v342_v1 = vld [vmem:[%s1382_s8 + $0x18] sm:$0xff] }
  0x6c   : > { %898 = vmatprep.subr.mxu1 %v368_v37  ;;  %861 = vmatpush3.msra.mxu0 %v231_v38  ;;  %v362_v61 = vld [vmem:[#allocation5 + $0x180] sm:$0xff]  ;;  %v222_v63 = vld [vmem:[%s1382_s8 + $0x8] sm:$0xff]  ;;  %v341_v3 = vld [vmem:[%s1382_s8 + $0x10] sm:$0xff] }
  0x6d   : > { %899 = vmatpush3.msra.mxu1 %v352_v39  ;;  %862 = vmatprep.subr.mxu0 %v246_v40  ;;  %v225_v62 = vld [vmem:[#allocation5] sm:$0xff]  ;;  %v499_v4 = vld [vmem:[#allocation5 + $0x2f8] sm:$0xff]  ;;  %v498_v8 = vld [vmem:[#allocation5 + $0x2f0] sm:$0xff] }
  0x6e   : > { %900 = vmatprep.subr.mxu1 %v367_v41  ;;  %863 = vmatpush3.msra.mxu0 %v230_v42  ;;  %v346_v0 = vld [vmem:[#allocation5 + $0x100] sm:$0xff]  ;;  %v621_v5 = vld [vmem:[#allocation5 + $0x3f8] sm:$0xff]  ;;  %v620_v9 = vld [vmem:[#allocation5 + $0x3f0] sm:$0xff] }
  0x6f   : > { %901 = vmatpush3.msra.mxu1 %v351_v43  ;;  %864 = vmatprep.subr.mxu0 %v245_v44  ;;  %v221_v2 = vld [vmem:[%s1382_s8] sm:$0xff]  ;;  %v483_v6 = vld [vmem:[#allocation5 + $0x278] sm:$0xff]  ;;  %v482_v10 = vld [vmem:[#allocation5 + $0x270] sm:$0xff] }
  0x70   : > { %902 = vmatprep.subr.mxu1 %v366_v45  ;;  %865 = vmatpush3.msra.mxu0 %v229_v46  ;;  %v605_v7 = vld [vmem:[#allocation5 + $0x378] sm:$0xff]  ;;  %v604_v11 = vld [vmem:[#allocation5 + $0x370] sm:$0xff]  ;;  %v497_v12 = vld [vmem:[#allocation5 + $0x2e8] sm:$0xff] }
  0x71   : > { %903 = vmatpush3.msra.mxu1 %v350_v47  ;;  %866 = vmatprep.subr.mxu0 %v244_v48  ;;  %v619_v13 = vld [vmem:[#allocation5 + $0x3e8] sm:$0xff]  ;;  %v496_v16 = vld [vmem:[#allocation5 + $0x2e0] sm:$0xff]  ;;  %v495_v20 = vld [vmem:[#allocation5 + $0x2d8] sm:$0xff] }
  0x72   : > { %904 = vmatprep.subr.mxu1 %v365_v49  ;;  %867 = vmatpush3.msra.mxu0 %v228_v50  ;;  %v481_v14 = vld [vmem:[#allocation5 + $0x268] sm:$0xff]  ;;  %v618_v17 = vld [vmem:[#allocation5 + $0x3e0] sm:$0xff]  ;;  %v617_v21 = vld [vmem:[#allocation5 + $0x3d8] sm:$0xff] }
  0x73   : > { %905 = vmatpush3.msra.mxu1 %v349_v51  ;;  %868 = vmatprep.subr.mxu0 %v243_v52  ;;  %v603_v15 = vld [vmem:[#allocation5 + $0x368] sm:$0xff]  ;;  %v480_v18 = vld [vmem:[#allocation5 + $0x260] sm:$0xff]  ;;  %v479_v22 = vld [vmem:[#allocation5 + $0x258] sm:$0xff] }
  0x74   : > { %906 = vmatprep.subr.mxu1 %v364_v53  ;;  %869 = vmatpush3.msra.mxu0 %v227_v54  ;;  %v602_v19 = vld [vmem:[#allocation5 + $0x360] sm:$0xff]  ;;  %v601_v23 = vld [vmem:[#allocation5 + $0x358] sm:$0xff]  ;;  %v494_v24 = vld [vmem:[#allocation5 + $0x2d0] sm:$0xff] }
  0x75   : > { %907 = vmatpush3.msra.mxu1 %v348_v55  ;;  %870 = vmatprep.subr.mxu0 %v242_v56  ;;  %v616_v25 = vld [vmem:[#allocation5 + $0x3d0] sm:$0xff]  ;;  %v493_v28 = vld [vmem:[#allocation5 + $0x2c8] sm:$0xff]  ;;  %v492_v32 = vld [vmem:[#allocation5 + $0x2c0] sm:$0xff] }
  0x76   : > { %908 = vmatprep.subr.mxu1 %v363_v57  ;;  %871 = vmatpush3.msra.mxu0 %v226_v58  ;;  %v478_v26 = vld [vmem:[#allocation5 + $0x250] sm:$0xff]  ;;  %v615_v29 = vld [vmem:[#allocation5 + $0x3c8] sm:$0xff]  ;;  %v614_v33 = vld [vmem:[#allocation5 + $0x3c0] sm:$0xff] }
  0x77   : > { %909 = vmatpush3.msra.mxu1 %v347_v59  ;;  %872 = vmatprep.subr.mxu0 %v241_v60  ;;  %v600_v27 = vld [vmem:[#allocation5 + $0x350] sm:$0xff]  ;;  %v477_v30 = vld [vmem:[#allocation5 + $0x248] sm:$0xff]  ;;  %v476_v34 = vld [vmem:[#allocation5 + $0x240] sm:$0xff] }
  0x78   : > { %910 = vmatprep.subr.mxu1 %v362_v61  ;;  %873 = vmatpush3.msra.mxu0 %v225_v62  ;;  %v599_v31 = vld [vmem:[#allocation5 + $0x348] sm:$0xff]  ;;  %v598_v35 = vld [vmem:[#allocation5 + $0x340] sm:$0xff]  ;;  %v491_v36 = vld [vmem:[#allocation5 + $0x2b8] sm:$0xff] }
  0x79   : > { %328 = vmatprep.mubr.f32.mxu0 %v222_v63  ;;  %911 = vmatpush3.msra.mxu1 %v346_v0  ;;  %v613_v37 = vld [vmem:[#allocation5 + $0x3b8] sm:$0xff]  ;;  %v490_v40 = vld [vmem:[#allocation5 + $0x2b0] sm:$0xff]  ;;  %v489_v44 = vld [vmem:[#allocation5 + $0x2a8] sm:$0xff] }
  0x7a   : > { %450 = vmatprep.mubr.f32.mxu1 %v342_v1  ;;  %329 = vmatmul.mubr.f32.vlgmr.msra.gmra.mxu0 %v221_v2  ;;  %v475_v38 = vld [vmem:[#allocation5 + $0x238] sm:$0xff]  ;;  %v612_v41 = vld [vmem:[#allocation5 + $0x3b0] sm:$0xff]  ;;  %v611_v45 = vld [vmem:[#allocation5 + $0x3a8] sm:$0xff] }
  0x7b   : > { %451 = vmatmul.mubr.f32.vlgmr.msra.gmra.mxu1 %v341_v3  ;;  %918 = vmatprep.subr.mxu0 %v499_v4  ;;  %v597_v39 = vld [vmem:[#allocation5 + $0x338] sm:$0xff]  ;;  %v474_v42 = vld [vmem:[#allocation5 + $0x230] sm:$0xff]  ;;  %v473_v46 = vld [vmem:[#allocation5 + $0x228] sm:$0xff] }
  0x7c   : > { %956 = vmatprep.subr.mxu1 %v621_v5  ;;  %919 = vmatpush3.msra.mxu0 %v483_v6  ;;  %v596_v43 = vld [vmem:[#allocation5 + $0x330] sm:$0xff]  ;;  %v595_v47 = vld [vmem:[#allocation5 + $0x328] sm:$0xff]  ;;  %v488_v48 = vld [vmem:[#allocation5 + $0x2a0] sm:$0xff] }
  0x7d   : > { %957 = vmatpush3.msra.mxu1 %v605_v7  ;;  %920 = vmatprep.subr.mxu0 %v498_v8  ;;  %v610_v49 = vld [vmem:[#allocation5 + $0x3a0] sm:$0xff]  ;;  %v487_v52 = vld [vmem:[#allocation5 + $0x298] sm:$0xff]  ;;  %v224_v54 = vld [vmem:[%s1382_s8 + $0x48] sm:$0xff] }
  0x7e   : > { %958 = vmatprep.subr.mxu1 %v620_v9  ;;  %921 = vmatpush3.msra.mxu0 %v482_v10  ;;  %v472_v50 = vld [vmem:[#allocation5 + $0x220] sm:$0xff]  ;;  %v609_v53 = vld [vmem:[#allocation5 + $0x398] sm:$0xff]  ;;  %v343_v59 = vld [vmem:[%s1382_s8 + $0x50] sm:$0xff] }
  0x7f   : > { %959 = vmatpush3.msra.mxu1 %v604_v11  ;;  %922 = vmatprep.subr.mxu0 %v497_v12  ;;  %v594_v51 = vld [vmem:[#allocation5 + $0x320] sm:$0xff]  ;;  %v344_v55 = vld [vmem:[%s1382_s8 + $0x58] sm:$0xff]  ;;  %v486_v60 = vld [vmem:[#allocation5 + $0x290] sm:$0xff] }
  0x80   : > { %960 = vmatprep.subr.mxu1 %v619_v13  ;;  %923 = vmatpush3.msra.mxu0 %v481_v14  ;;  %v471_v56 = vld [vmem:[#allocation5 + $0x218] sm:$0xff]  ;;  %v223_v58 = vld [vmem:[%s1382_s8 + $0x40] sm:$0xff]  ;;  %v608_v61 = vld [vmem:[#allocation5 + $0x390] sm:$0xff] }
  0x81   : > { %961 = vmatpush3.msra.mxu1 %v603_v15  ;;  %924 = vmatprep.subr.mxu0 %v496_v16  ;;  %v593_v57 = vld [vmem:[#allocation5 + $0x318] sm:$0xff]  ;;  %v470_v62 = vld [vmem:[#allocation5 + $0x210] sm:$0xff]  ;;  %v485_v0 = vld [vmem:[#allocation5 + $0x288] sm:$0xff] }
  0x82   : > { %962 = vmatprep.subr.mxu1 %v618_v17  ;;  %925 = vmatpush3.msra.mxu0 %v480_v18  ;;  %v592_v63 = vld [vmem:[#allocation5 + $0x310] sm:$0xff]  ;;  %v607_v1 = vld [vmem:[#allocation5 + $0x388] sm:$0xff]  ;;  %v484_v4 = vld [vmem:[#allocation5 + $0x280] sm:$0xff] }
  0x83   : > { %963 = vmatpush3.msra.mxu1 %v602_v19  ;;  %926 = vmatprep.subr.mxu0 %v495_v20  ;;  %v469_v2 = vld [vmem:[#allocation5 + $0x208] sm:$0xff]  ;;  %v606_v5 = vld [vmem:[#allocation5 + $0x380] sm:$0xff]  ;;  %v586_v9 = vld [vmem:[%s1382_s8 + $0x38] sm:$0xff] }
  0x84   : > { %964 = vmatprep.subr.mxu1 %v617_v21  ;;  %927 = vmatpush3.msra.mxu0 %v479_v22  ;;  %v591_v3 = vld [vmem:[#allocation5 + $0x308] sm:$0xff]  ;;  %v468_v6 = vld [vmem:[#allocation5 + $0x200] sm:$0xff]  ;;  %v585_v11 = vld [vmem:[%s1382_s8 + $0x30] sm:$0xff] }
  0x85   : > { %965 = vmatpush3.msra.mxu1 %v601_v23  ;;  %928 = vmatprep.subr.mxu0 %v494_v24  ;;  %v464_v7 = vld [vmem:[%s1382_s8 + $0x28] sm:$0xff]  ;;  %v590_v8 = vld [vmem:[#allocation5 + $0x300] sm:$0xff]  ;;  %v588_v13 = vld [vmem:[%s1382_s8 + $0x78] sm:$0xff] }
  0x86   : > { %966 = vmatprep.subr.mxu1 %v616_v25  ;;  %929 = vmatpush3.msra.mxu0 %v478_v26  ;;  %v463_v10 = vld [vmem:[%s1382_s8 + $0x20] sm:$0xff]  ;;  %v466_v12 = vld [vmem:[%s1382_s8 + $0x68] sm:$0xff]  ;;  %v587_v15 = vld [vmem:[%s1382_s8 + $0x70] sm:$0xff] }
  0x87   : > { %967 = vmatpush3.msra.mxu1 %v600_v27  ;;  %930 = vmatprep.subr.mxu0 %v493_v28  ;;  %v465_v14 = vld [vmem:[%s1382_s8 + $0x60] sm:$0xff] }
  0x88   : > { %968 = vmatprep.subr.mxu1 %v615_v29  ;;  %931 = vmatpush3.msra.mxu0 %v477_v30  ;;  %v828_v18 = vld [vmem:[#allocation7] ss:$0 sm:$0xff]  ;;  %v829_v20 = vld [vmem:[#allocation7 + $0x1] ss:$0 sm:$0xff] }
  0x89   : > { %969 = vmatpush3.msra.mxu1 %v599_v31  ;;  %932 = vmatprep.subr.mxu0 %v492_v32 }
  0x8a   : > { %970 = vmatprep.subr.mxu1 %v614_v33  ;;  %933 = vmatpush3.msra.mxu0 %v476_v34 }
  0x8b   : > { %971 = vmatpush3.msra.mxu1 %v598_v35  ;;  %934 = vmatprep.subr.mxu0 %v491_v36  ;;  %v830_v36 = vld [vmem:[#allocation7 + $0x2] ss:$0 sm:$0xff] }
  0x8c   : > { %972 = vmatprep.subr.mxu1 %v613_v37  ;;  %935 = vmatpush3.msra.mxu0 %v475_v38  ;;  %v831_v38 = vld [vmem:[#allocation7 + $0x3] ss:$0 sm:$0xff] }
  0x8d   : > { %973 = vmatpush3.msra.mxu1 %v597_v39  ;;  %936 = vmatprep.subr.mxu0 %v490_v40 }
  0x8e   : > { %974 = vmatprep.subr.mxu1 %v612_v41  ;;  %937 = vmatpush3.msra.mxu0 %v474_v42 }
  0x8f   : > { %975 = vmatpush3.msra.mxu1 %v596_v43  ;;  %938 = vmatprep.subr.mxu0 %v489_v44 }
  0x90   : > { %976 = vmatprep.subr.mxu1 %v611_v45  ;;  %939 = vmatpush3.msra.mxu0 %v473_v46 }
  0x91   : > { %977 = vmatpush3.msra.mxu1 %v595_v47  ;;  %940 = vmatprep.subr.mxu0 %v488_v48 }
  0x92   : > { %978 = vmatprep.subr.mxu1 %v610_v49  ;;  %941 = vmatpush3.msra.mxu0 %v472_v50 }
  0x93   : > { %979 = vmatpush3.msra.mxu1 %v594_v51  ;;  %942 = vmatprep.subr.mxu0 %v487_v52 }
  0x94   : > { %980 = vmatprep.subr.mxu1 %v609_v53  ;;  %333 = vmatprep.mubr.f32.mxu0 %v224_v54 }
  0x95   : > { %455 = vmatprep.mubr.f32.mxu1 %v344_v55  ;;  %943 = vmatpush3.msra.mxu0 %v471_v56 }
  0x96   : > { %981 = vmatpush3.msra.mxu1 %v593_v57  ;;  %334 = vmatmul.mubr.f32.gmra.mxu0 %v223_v58 }
  0x97   : > { %456 = vmatmul.mubr.f32.gmra.mxu1 %v343_v59  ;;  %944 = vmatprep.subr.mxu0 %v486_v60 }
  0x98   : > { %982 = vmatprep.subr.mxu1 %v608_v61  ;;  %945 = vmatpush3.msra.mxu0 %v470_v62 }
  0x99   : > { %983 = vmatpush3.msra.mxu1 %v592_v63  ;;  %946 = vmatprep.subr.mxu0 %v485_v0 }
  0x9a   : > { %984 = vmatprep.subr.mxu1 %v607_v1  ;;  %947 = vmatpush3.msra.mxu0 %v469_v2 }
  0x9b   : > { %985 = vmatpush3.msra.mxu1 %v591_v3  ;;  %948 = vmatprep.subr.mxu0 %v484_v4 }
  0x9c   : > { %986 = vmatprep.subr.mxu1 %v606_v5  ;;  %949 = vmatpush3.msra.mxu0 %v468_v6 }
  0x9d   : > { %572 = vmatprep.mubr.f32.mxu0 %v464_v7  ;;  %987 = vmatpush3.msra.mxu1 %v590_v8 }
  0x9e   : > { %694 = vmatprep.mubr.f32.mxu1 %v586_v9  ;;  %573 = vmatmul.mubr.f32.vlgmr.msra.gmra.mxu0 %v463_v10 }
  0x9f   : > { %695 = vmatmul.mubr.f32.vlgmr.msra.gmra.mxu1 %v585_v11  ;;  %577 = vmatprep.mubr.f32.mxu0 %v466_v12 }
  0xa0   : > { %699 = vmatprep.mubr.f32.mxu1 %v588_v13 }
  0xa2   : > { %578 = vmatmul.mubr.f32.gmra.mxu0 %v465_v14 }
  0xa3   : > { %700 = vmatmul.mubr.f32.gmra.mxu1 %v587_v15 }
 0x13a   : > { %v874_v16 = vpop.f32.mrf.mxu0 }
 0x13b   : > { %v912_v17 = vpop.f32.mrf.mxu1 }
 0x13c   : > { %v875_v19 = vpop.f32.mrf.mxu0 }
 0x13d   : > { %v913_v21 = vpop.f32.mrf.mxu1  ;;  %v876_v22 = vadd.f32 %v875_v19, %v874_v16 }
 0x13e   : > { %v914_v23 = vadd.f32 %v913_v21, %v912_v17 }
 0x13f   : > { %v331_v24 = vadd.f32 %v876_v22, %v828_v18 }
 0x140   : > { %v453_v25 = vadd.f32 %v914_v23, %v829_v20 }
 0x141   : > { %339 = vst [vmem:[%s1409_s20] sm:$0xff] %v331_v24 }
 0x142   : > { %461 = vst [vmem:[%s1409_s20 + $0x8] sm:$0xff] %v453_v25 }
 0x156   : > { %v877_v26 = vpop.f32.mrf.mxu0 }
 0x157   : > { %v915_v27 = vpop.f32.mrf.mxu1 }
 0x158   : > { %v878_v28 = vpop.f32.mrf.mxu0 }
 0x159   : > { %v916_v29 = vpop.f32.mrf.mxu1  ;;  %v879_v30 = vadd.f32 %v878_v28, %v877_v26 }
 0x15a   : > { %v917_v31 = vadd.f32 %v916_v29, %v915_v27 }
 0x15b   : > { %v336_v32 = vadd.f32 %v879_v30, %v828_v18 }
 0x15c   : > { %v458_v33 = vadd.f32 %v917_v31, %v829_v20 }
 0x15d   : > { %340 = vst [vmem:[%s1409_s20 + $0x20] sm:$0xff] %v336_v32 }
 0x15e   : > { %462 = vst [vmem:[%s1409_s20 + $0x28] sm:$0xff] %v458_v33  ;;  %v950_v34 = vpop.f32.mrf.mxu0 }
 0x15f   : > { %v988_v35 = vpop.f32.mrf.mxu1 }
 0x160   : > { %v951_v37 = vpop.f32.mrf.mxu0 }
 0x161   : > { %v989_v39 = vpop.f32.mrf.mxu1  ;;  %v952_v40 = vadd.f32 %v951_v37, %v950_v34 }
 0x162   : > { %v990_v41 = vadd.f32 %v989_v39, %v988_v35  ;;  %v953_v42 = vpop.f32.mrf.mxu0 }
 0x163   : > { %v991_v43 = vpop.f32.mrf.mxu1  ;;  %v575_v44 = vadd.f32 %v952_v40, %v830_v36 }
 0x164   : > { %v697_v45 = vadd.f32 %v990_v41, %v831_v38  ;;  %v954_v46 = vpop.f32.mrf.mxu0 }
 0x165   : > { %v992_v47 = vpop.f32.mrf.mxu1  ;;  %583 = vst [vmem:[%s1409_s20 + $0x10] sm:$0xff] %v575_v44  ;;  %v955_v48 = vadd.f32 %v954_v46, %v953_v42 }
 0x166   : > { %705 = vst [vmem:[%s1409_s20 + $0x18] sm:$0xff] %v697_v45  ;;  %v993_v49 = vadd.f32 %v992_v47, %v991_v43 }
 0x167   : > { %v580_v50 = vadd.f32 %v955_v48, %v830_v36 }
 0x168   : > { %v702_v51 = vadd.f32 %v993_v49, %v831_v38 }
 0x169   : > { %584 = vst [vmem:[%s1409_s20 + $0x30] sm:$0xff] %v580_v50 }
 0x16a   : > { %706 = vst [vmem:[%s1409_s20 + $0x38] sm:$0xff] %v702_v51 }
 0x16b   : > { %1162 = shalt.err (!%p1159_p9)
}
 0x16c   : > { %s1163_s25 = scalar_lea.hbm %s1424_s10, 1024  ;;  %s1167_s6 = scalar_lea.hbm %s1472_s3, 2048 }
 0x16d   : > { %p1164_p13 = scmp.ne.s32.totalorder %s1424_s10, %s1163_s25  ;;  %p1168_p4 = scmp.lt.s32.totalorder %s1424_s10, %s1472_s3 }
 0x16e   : > { %p1169_p8 = scmp.lt.s32.totalorder %s1167_s6, %s1163_s25 }
 0x16f   : > { %p1165_p5 = pnand %p1164_p13, %p1488_p10 }
 0x170   : > { %p1170_p7 = por %p1169_p8, %p1168_p4 }
 0x171   : > { %p1166_p0 = pneg %p1165_p5 }
 0x173   : > { %p1171_p11 = pnand %p1170_p7, %p1166_p0 }
 0x175   : > { %1174 = shalt.err (!%p1171_p11)
}
 0x176   : > { %s1229_s18 = smov 512   ;;  %s1230_s20 = smov 32  }
 0x177   : > { %1004 = dma.vmem_to_hbm [thread:$0]  (%p1488_p10), %s1417_s27, 1024, %s1424_s10, %s708_s16, %s1229_s18, %s1229_s18, %s1230_s20  }
 0x178 PF: > { %s737_s29 = sand.u32 1, %s1205_s12   ;;  %p1489_p1 = scmp.ne.s32.totalorder %s1478_s19, 0 }
 0x179   : > { %p1490_p2 = scmp.ge.s32.totalorder %s1217_s15, 2  ;;  %s738_s30 = scalar_lea.sflag [#allocation4], %s737_s29 }
 0x17b   : > { %p1018_p6 = pnand %p1490_p2, %p1489_p1 }
 0x17d   : > { %p1019_p12 = pneg %p1018_p6 }
 0x17f   : > { %1200 = dma.done.wait (%p1019_p12), %s738_s30, 1024  }
 0x180   : > { %1202 = vsyncadd (%p1019_p12), %s738_s30, 4294966272  ;;  %p17_p3 = scmp.ge.s32.totalorder %s1323_s9, 4   ;;  %s1491_s12 = smov %s1209_s13 }
 0x181   : > { %s1492_s13 = smov %s1213_s14  ;;  %s1493_s14 = smov %s1332_s17 }
 0x182   : > { %s1494_s15 = smov %s1323_s9  ;;  %19 = sbr.rel (!%p17_p3) target bundleno = 6 (0x6), region = 91 }
 0x187   :  { %743 = vsyncpa [#allocation3], 1 }
 0x188   :  { %745 = vsyncpa [#allocation3 + $0x1], 1 }
 0x189   :  { %746 = vsyncpa [#allocation6], 1 }
 0x18a   :  { %747 = vsyncpa [#allocation4], 1 }
 0x18b   :  { %749 = vsyncpa [#allocation4 + $0x1], 1 }

</bundles_post_ra>
